<compile_context>
chip_gen: v7x
topology: tpu7x:2x2x1
jax: 0.10.0
libtpu: 0.0.40
codegen_flags: <defaults>
</compile_context>

<pallas_src>
import jax
import jax.numpy as jnp
from jax.experimental import pallas as pl
from jax.experimental.pallas import tpu as pltpu


# -----------------------------------------------------------------------------
# Production path: pure-JAX identity (zero launch overhead).
# -----------------------------------------------------------------------------
def scalar_forward(constant_param: jax.Array) -> jax.Array:
    """Pure-JAX Scalar.forward(): return the stored parameter as a 0-d scalar."""
    return constant_param.reshape(())


# -----------------------------------------------------------------------------
# Minimal Pallas kernel path (test/debug only).
# -----------------------------------------------------------------------------
def _scalar_forward_kernel(const_ref, out_ref):
    # SMEM scalar path: one sld, one sst (and out aliases in, so this is a
    # write of the same value back into the same buffer).
    out_ref[0] = const_ref[0]


@jax.jit
def scalar_forward_pallas(constant_param: jax.Array) -> jax.Array:
    """Pallas equivalent of Scalar.forward().

    Args:
      constant_param: float32 array of shape (1,) holding the parameter.

    Returns:
      float32 scalar (shape ()) — the parameter value, like PyTorch's forward.
    """
    out = pl.pallas_call(
        _scalar_forward_kernel,
        out_shape=jax.ShapeDtypeStruct((1,), jnp.float32),
        in_specs=[pl.BlockSpec(memory_space=pltpu.MemorySpace.SMEM)],
        out_specs=pl.BlockSpec(memory_space=pltpu.MemorySpace.SMEM),
        input_output_aliases={0: 0},
        cost_estimate=pl.CostEstimate(flops=0, transcendentals=0, bytes_accessed=8),
    )(constant_param)
    # Reshape to a true scalar at trace time (metadata-only).
    return out.reshape(())


def init_scalar_params(init_value: float) -> jax.Array:
    """Deterministic parameter init, matching Scalar.__init__(init_value)."""
    # Flat f32[1]: 1-D SMEM pads to next_pow2(4 B) = 4 B instead of a padded
    # [8,128]-word 2-D SMEM tile.
    return jnp.full((1,), init_value, dtype=jnp.float32)


if __name__ == "__main__":
    # Deterministic setup (PRNGKey kept for convention; the init is the literal
    # init_value, exactly as in the PyTorch module).
    _ = jax.random.PRNGKey(0)
    init_value = 0.5
    constant = init_scalar_params(init_value)

    # Production path: pure-JAX identity.
    ref = scalar_forward(constant)
    jax.block_until_ready(ref)
    assert ref.shape == () and ref.dtype == jnp.float32

    # Pallas kernel path (kept for the "kernel required" case): run once.
    result = scalar_forward_pallas(constant)
    jax.block_until_ready(result)

    assert result.shape == (), f"expected scalar, got shape {result.shape}"
    assert result.dtype == jnp.float32
    assert jnp.allclose(result, jnp.float32(init_value)), (float(result), init_value)
    assert jnp.allclose(result, ref)

    print("KERNEL_OK")
</pallas_src>

<mosaic_0001>
module attributes {stable_mosaic.version = 11 : i64} {
  func.func @_scalar_forward_kernel(%arg0: memref<1xf32, #tpu.memory_space<smem>>, %arg1: memref<1xf32, #tpu.memory_space<smem>>) attributes {dimension_semantics = [], scalar_prefetch = 0 : i64, scratch_operands = 0 : i64, tpu.core_type = #tpu.core_type<tc>} {
    %c0 = arith.constant 0 : index
    %0 = memref.load %arg0[%c0] : memref<1xf32, #tpu.memory_space<smem>>
    %c0_0 = arith.constant 0 : index
    %1 = memref.load %arg1[%c0_0] : memref<1xf32, #tpu.memory_space<smem>>
    memref.store %0, %arg1[%c0_0] : memref<1xf32, #tpu.memory_space<smem>>
    return
  }
}

</mosaic_0001>

<bundles_post_ra>
// kernel: scalar_forward_pallas.1
= control target key start
LH: loop header
LB: loop body
LE: loop exit
PB: predicated region body
PF: predicated region fallthrough
CT: control target
= control target key end

     0   :  { %7 = vsyncpa [#allocation4], 0  ;;  %s65_s0 = inlined_call_operand.<no memory space> [shape: f32[1], index: 0, kind: input, shape index: {}, may-alias: {0,1}]   ;;  %s66_s1 = inlined_call_operand.hbm [shape: f32[1], index: 1, kind: output, shape index: {}, may-alias: {0,1}]  }
   0x1   :  { %12 = sst [smem:[#allocation3]] %s65_s0  ;;  %s27_s10 = scalar_lea.hbm %s66_s1, 16 }
   0x2   :  { %p28_p0 = scmp.ne.s32.totalorder %s66_s1, %s27_s10  ;;  %p31_p1 = scmp.lt.u32.totalorder %s27_s10, %s66_s1 }
   0x4   :  { %p33_p2 = pnand %p31_p1, %p28_p0 }
   0x6   :  { %36 = shalt.err (!%p33_p2)
}
   0x7   :  { %s39_s15 = smov [#allocation3]  }
   0x8   :  { %20 = dma.smem_to_hbm %s39_s15, 16, %s66_s1, [#allocation4]  }
   0x9   :  { %37 = dma.done.wait [#allocation4], 16  }
   0xa   :  { %38 = vsyncadd [#allocation4], 4294967280 }
   0xb   :  { %24 = sfence }
   0xc   :  { %25 = vsyncpa [#allocation4], 1 }

</bundles_post_ra>
